<compile_context>
chip_gen: v6e
topology: v6e:2x2x1
jax: 0.10.0
libtpu: 0.0.40
codegen_flags: <defaults>
</compile_context>

<pallas_src>
import functools

import jax
import jax.numpy as jnp
from jax import lax
from jax.experimental import pallas as pl
from jax.experimental.pallas import tpu as pltpu

_LANE = 128
_SUBLANE = 8


def _round_up(v, m):
    return ((v + m - 1) // m) * m


def gcn_net_kernel(a_ref, x_ref, w1_ref, w2_ref, bias_ref, out_ref, *,
                   hidden, num_classes):
    a = a_ref[...]                                   # [Np, Np]
    x = x_ref[...]                                   # [Np, F]   (unpadded features)
    bias = bias_ref[...]                             # [2, Cp]
    b1 = bias[0:1, :hidden]                          # [1, H]
    b2 = bias[1:2, :]                                # [1, Cp] (padded lanes are 0)

    # ---- GCNConv 1 (reordered: (A @ X) @ W1, since F < HIDDEN) ----
    ax = jnp.dot(a, x, preferred_element_type=jnp.float32)                 # [Np, F]
    h = jnp.dot(ax, w1_ref[...], preferred_element_type=jnp.float32) + b1  # [Np, H]

    # ---- ReLU ----
    h = jnp.maximum(h, 0.0)

    # ---- Dropout ----
    # TODO(synk): training-mode dropout needs pltpu.prng_seed/prng_random_bits masking;
    # eval-mode dropout is identity, which matches self.training == False.

    # ---- GCNConv 2 (keep cheap order: A @ (H @ W2), since HIDDEN > C) ----
    hw2 = jnp.dot(h, w2_ref[...], preferred_element_type=jnp.float32)       # [Np, Cp]
    logits = jnp.dot(a, hw2, preferred_element_type=jnp.float32) + b2       # [Np, Cp]

    # ---- log_softmax over the real classes only (mask padded lanes) ----
    lane = lax.broadcasted_iota(jnp.int32, logits.shape, 1)
    logits = jnp.where(lane < num_classes, logits, jnp.float32(-1e30))
    m = jnp.max(logits, axis=1, keepdims=True)
    s = logits - m
    lse = jnp.log(jnp.sum(jnp.exp(s), axis=1, keepdims=True))
    out_ref[...] = s - lse                                                  # lane-dense store


def prepare_params(w1, b1, w2, b2):
    """One-time parameter packing (static across forward calls).

    Only W2's output/lane dim is padded to 128; W1 stays at [F, H].  Biases are
    fused into a single (2, Cp) slab (one DMA instead of two padded tiles)."""
    f_in, hid = w1.shape
    c = w2.shape[1]
    c_p = _round_up(c, _LANE)

    w2_p = lax.pad(w2.astype(jnp.float32), jnp.float32(0.0),
                   ((0, 0, 0), (0, c_p - c, 0)))                       # [H, Cp]
    b1_row = lax.pad(b1.reshape(1, -1).astype(jnp.float32), jnp.float32(0.0),
                     ((0, 0, 0), (0, c_p - hid, 0)))                   # [1, Cp]
    b2_row = lax.pad(b2.reshape(1, -1).astype(jnp.float32), jnp.float32(0.0),
                     ((0, 0, 0), (0, c_p - c, 0)))                     # [1, Cp]
    bias = jnp.concatenate([b1_row, b2_row], axis=0)                   # [2, Cp]
    return w1.astype(jnp.float32), w2_p, bias, hid, c


def gcn_net(a_hat, x, w1, w2_p, bias, hidden, num_classes):
    """Forward pass.  w1/w2_p/bias come from prepare_params (no per-call packing)."""
    n, f = x.shape
    c_p = w2_p.shape[1]

    # Only pad the node dim (sublanes) if needed; F/H stay unpadded.
    n_p = _round_up(n, _SUBLANE)
    if n_p != n:
        a_hat = lax.pad(a_hat, jnp.float32(0.0),
                        ((0, n_p - n, 0), (0, n_p - n, 0)))
        x = lax.pad(x, jnp.float32(0.0), ((0, n_p - n, 0), (0, 0, 0)))

    # Cost estimate from the real operand shapes (not zero-padded K dims).
    flops = 2 * (n_p * n_p * f            # A @ X
                 + n_p * f * hidden       # (AX) @ W1
                 + n_p * hidden * c_p     # H @ W2
                 + n_p * n_p * c_p)       # A @ (HW2)
    bytes_accessed = 4 * (a_hat.size + x.size + w1.size + w2_p.size
                          + bias.size + n_p * c_p)

    vmem = pl.BlockSpec(memory_space=pltpu.MemorySpace.VMEM)
    kernel = functools.partial(gcn_net_kernel, hidden=hidden,
                               num_classes=num_classes)

    out_p = pl.pallas_call(
        kernel,
        out_shape=jax.ShapeDtypeStruct((n_p, c_p), jnp.float32),
        in_specs=[vmem] * 5,
        out_specs=vmem,
        cost_estimate=pl.CostEstimate(
            flops=flops, transcendentals=n_p * c_p, bytes_accessed=bytes_accessed
        ),
    )(a_hat, x, w1, w2_p, bias)

    # Padded class lanes hold large-negative garbage; callers must use this slice.
    return out_p[:n, :num_classes]


def build_normalized_adjacency(edge_index, num_nodes):
    """Dense equivalent of PyG GCNConv normalization:
       A counted per-edge (duplicates add), remaining self-loops added only where
       missing, D = rowsum(A_tilde), A_hat = D^-1/2 A_tilde D^-1/2, stored as
       A_hat[dst, src] so out[i] = sum_{j->i} norm_ij * x_j."""
    src, dst = edge_index[0], edge_index[1]
    a = jnp.zeros((num_nodes, num_nodes), jnp.float32)
    a = a.at[dst, src].add(1.0)                      # per-edge counting (dups add)
    diag = jnp.diagonal(a)
    a = a + jnp.diag(jnp.where(diag > 0, 0.0, 1.0))  # add only missing self-loops
    deg = jnp.sum(a, axis=1)
    dinv = jnp.where(deg > 0, 1.0 / jnp.sqrt(deg), 0.0)
    return dinv[:, None] * a * dinv[None, :]


if __name__ == "__main__":
    # Small synthetic problem consistent with the module's __init__:
    #   num_features=8, hidden=32, num_classes=4, N=16 nodes.
    N, F_IN, HIDDEN, C = 16, 8, 32, 4

    key = jax.random.PRNGKey(0)
    k_x, k_w1, k_w2 = jax.random.split(key, 3)

    x = jax.random.normal(k_x, (N, F_IN), jnp.float32)

    # Deterministic graph: bidirectional ring over N nodes.
    src = jnp.arange(N, dtype=jnp.int32)
    dst = (src + 1) % N
    edge_index = jnp.stack(
        [jnp.concatenate([src, dst]), jnp.concatenate([dst, src])], axis=0
    )  # [2, 2N]

    w1 = jax.random.normal(k_w1, (F_IN, HIDDEN), jnp.float32) * (1.0 / jnp.sqrt(F_IN))
    b1 = jnp.zeros((1, HIDDEN), jnp.float32)
    w2 = jax.random.normal(k_w2, (HIDDEN, C), jnp.float32) * (1.0 / jnp.sqrt(HIDDEN))
    b2 = jnp.zeros((1, C), jnp.float32)

    a_hat = build_normalized_adjacency(edge_index, N)

    # One-time parameter packing (hoisted out of the per-call path).
    w1_k, w2_p, bias, hid, num_classes = prepare_params(w1, b1, w2, b2)

    out = gcn_net(a_hat, x, w1_k, w2_p, bias, hid, num_classes)
    out = jax.block_until_ready(out)
    assert out.shape == (N, C)

    # Sanity 1: log_softmax rows exponentiate-and-sum to 1.
    row_sums = jnp.sum(jnp.exp(out), axis=1)
    assert bool(jnp.all(jnp.abs(row_sums - 1.0) < 1e-4))

    # Sanity 2: matches a pure-JAX reference of the same forward pass.
    h_ref = jnp.maximum(a_hat @ (x @ w1) + b1, 0.0)
    logits_ref = a_hat @ (h_ref @ w2) + b2
    ref = jax.nn.log_softmax(logits_ref, axis=1)
    assert bool(jnp.all(jnp.abs(out - ref) < 1e-4))

    print("KERNEL_OK")
</pallas_src>

<mosaic_0001>
module attributes {stable_mosaic.version = 11 : i64} {
  func.func @gcn_net_kernel(%arg0: memref<16x16xf32, #tpu.memory_space<vmem>>, %arg1: memref<16x8xf32, #tpu.memory_space<vmem>>, %arg2: memref<8x32xf32, #tpu.memory_space<vmem>>, %arg3: memref<32x128xf32, #tpu.memory_space<vmem>>, %arg4: memref<2x128xf32, #tpu.memory_space<vmem>>, %arg5: memref<16x128xf32, #tpu.memory_space<vmem>>) attributes {dimension_semantics = [], scalar_prefetch = 0 : i64, scratch_operands = 0 : i64, tpu.core_type = #tpu.core_type<tc>} {
    %c0 = arith.constant 0 : index
    %c0_0 = arith.constant 0 : index
    %0 = vector.load %arg0[%c0, %c0_0] : memref<16x16xf32, #tpu.memory_space<vmem>>, vector<16x16xf32>
    %c0_1 = arith.constant 0 : index
    %c0_2 = arith.constant 0 : index
    %1 = vector.load %arg1[%c0_1, %c0_2] : memref<16x8xf32, #tpu.memory_space<vmem>>, vector<16x8xf32>
    %c0_3 = arith.constant 0 : index
    %c0_4 = arith.constant 0 : index
    %2 = vector.load %arg4[%c0_3, %c0_4] : memref<2x128xf32, #tpu.memory_space<vmem>>, vector<2x128xf32>
    %3 = vector.extract_strided_slice %2 {offsets = [0, 0], sizes = [1, 32], strides = [1, 1]} : vector<2x128xf32> to vector<1x32xf32>
    %4 = vector.extract_strided_slice %2 {offsets = [1, 0], sizes = [1, 128], strides = [1, 1]} : vector<2x128xf32> to vector<1x128xf32>
    %cst = arith.constant dense<0.000000e+00> : vector<16x8xf32>
    %5 = tpu.matmul %0, %1, %cst {dimension_numbers = #tpu.dot_dimension_numbers<[1], [0], [0], [1], [0, 0, 1, 1], [], []>} : vector<16x16xf32>, vector<16x8xf32>, vector<16x8xf32> -> vector<16x8xf32>
    %c0_5 = arith.constant 0 : index
    %c0_6 = arith.constant 0 : index
    %6 = vector.load %arg2[%c0_5, %c0_6] : memref<8x32xf32, #tpu.memory_space<vmem>>, vector<8x32xf32>
    %cst_7 = arith.constant dense<0.000000e+00> : vector<16x32xf32>
    %7 = tpu.matmul %5, %6, %cst_7 {dimension_numbers = #tpu.dot_dimension_numbers<[1], [0], [0], [1], [0, 0, 1, 1], [], []>} : vector<16x8xf32>, vector<8x32xf32>, vector<16x32xf32> -> vector<16x32xf32>
    %8 = vector.broadcast %3 : vector<1x32xf32> to vector<16x32xf32>
    %9 = arith.addf %7, %8 : vector<16x32xf32>
    %cst_8 = arith.constant 0.000000e+00 : f32
    %10 = vector.broadcast %cst_8 : f32 to vector<16x32xf32>
    %11 = arith.maximumf %9, %10 : vector<16x32xf32>
    %c0_9 = arith.constant 0 : index
    %c0_10 = arith.constant 0 : index
    %12 = vector.load %arg3[%c0_9, %c0_10] : memref<32x128xf32, #tpu.memory_space<vmem>>, vector<32x128xf32>
    %cst_11 = arith.constant dense<0.000000e+00> : vector<16x128xf32>
    %13 = tpu.matmul %11, %12, %cst_11 {dimension_numbers = #tpu.dot_dimension_numbers<[1], [0], [0], [1], [0, 0, 1, 1], [], []>} : vector<16x32xf32>, vector<32x128xf32>, vector<16x128xf32> -> vector<16x128xf32>
    %cst_12 = arith.constant dense<0.000000e+00> : vector<16x128xf32>
    %14 = tpu.matmul %0, %13, %cst_12 {dimension_numbers = #tpu.dot_dimension_numbers<[1], [0], [0], [1], [0, 0, 1, 1], [], []>} : vector<16x16xf32>, vector<16x128xf32>, vector<16x128xf32> -> vector<16x128xf32>
    %15 = vector.broadcast %4 : vector<1x128xf32> to vector<16x128xf32>
    %16 = arith.addf %14, %15 : vector<16x128xf32>
    %17 = tpu.iota {dimensions = array<i32: 1>} : vector<16x128xi32>
    %c4_i32 = arith.constant 4 : i32
    %18 = vector.broadcast %c4_i32 : i32 to vector<16x128xi32>
    %19 = arith.cmpi slt, %17, %18 : vector<16x128xi32>
    %cst_13 = arith.constant -1.000000e+30 : f32
    %20 = vector.broadcast %cst_13 : f32 to vector<16x128xf32>
    %21 = arith.select %19, %16, %20 : vector<16x128xi1>, vector<16x128xf32>
    %cst_14 = arith.constant dense<0xFF800000> : vector<16xf32>
    %22 = vector.multi_reduction <maximumf>, %21, %cst_14 [1] : vector<16x128xf32> to vector<16xf32>
    %23 = vector.shape_cast %22 : vector<16xf32> to vector<16x1xf32>
    %24 = vector.broadcast %23 : vector<16x1xf32> to vector<16x128xf32>
    %25 = arith.subf %21, %24 : vector<16x128xf32>
    %26 = math.exp %25 : vector<16x128xf32>
    %cst_15 = arith.constant dense<0.000000e+00> : vector<16xf32>
    %27 = vector.multi_reduction <add>, %26, %cst_15 [1] : vector<16x128xf32> to vector<16xf32>
    %28 = vector.shape_cast %27 : vector<16xf32> to vector<16x1xf32>
    %29 = math.log %28 : vector<16x1xf32>
    %30 = vector.broadcast %29 : vector<16x1xf32> to vector<16x128xf32>
    %31 = arith.subf %25, %30 : vector<16x128xf32>
    %c0_16 = arith.constant 0 : index
    %c0_17 = arith.constant 0 : index
    %32 = vector.load %arg5[%c0_16, %c0_17] : memref<16x128xf32, #tpu.memory_space<vmem>>, vector<16x128xf32>
    tpu.vector_store %arg5[%c0_16, %c0_17], %31 {strides = array<i32>} : memref<16x128xf32, #tpu.memory_space<vmem>>, vector<16x128xf32>,
    return
  }
}

</mosaic_0001>

<bundles_post_ra>
// kernel: tpu_custom_call.1
= control target key start
LH: loop header
LB: loop body
LE: loop exit
PB: predicated region body
PF: predicated region fallthrough
CT: control target
= control target key end

     0   :  { %10 = vsyncpa [#allocation3], 0  ;;  %s599_s0 = inlined_call_operand.vmem [shape: f32[16,16], index: 0, kind: input, shape index: {}]   ;;  %s600_s1 = inlined_call_operand.vmem [shape: f32[16,8], index: 1, kind: input, shape index: {}]   ;;  %s601_s2 = inlined_call_operand.vmem [shape: f32[8,32], index: 2, kind: input, shape index: {}]   ;;  %s602_s3 = inlined_call_operand.hbm [shape: f32[32,128], index: 3, kind: input, shape index: {}]   ;;  %s603_s4 = inlined_call_operand.vmem [shape: f32[2,128], index: 4, kind: input, shape index: {}]   ;;  %s604_s5 = inlined_call_operand.hbm [shape: f32[16,128], index: 5, kind: output, shape index: {}]  }
   0x1   :  { %11 = vsyncpa [#allocation4], 0  ;;  %s531_s18 = smov [#allocation2]  }
   0x2   :  { %s23_s19 = sshll.u32 %s531_s18, 4  ;;  %s24_s19 = int_to_ptr.vmem [resolvable:$true] %s23_s19 }
   0x3   :  { %s495_s20 = scalar_lea.vmem %s24_s19, 512  ;;  %p500_p1 = scmp.lt.s32.totalorder %s24_s19, %s24_s19 }
   0x4   :  { %p496_p0 = scmp.ne.s32.totalorder %s24_s19, %s495_s20  ;;  %p501_p2 = scmp.lt.s32.totalorder %s495_s20, %s495_s20 }
   0x6   :  { %p502_p3 = por %p501_p2, %p500_p1 }
   0x8   :  { %p503_p4 = pnand %p502_p3, %p496_p0 }
   0xa   :  { %506 = shalt.err (!%p503_p4)
}
   0xb   :  { %s532_s21 = smov 128   ;;  %s533_s22 = smov 8  }
   0xc   :  { %29 = dma.hbm_to_vmem [thread:$0]  %s602_s3, 512, %s24_s19, [#allocation3], %s532_s21, %s532_s21, %s533_s22  }
   0xd   :  { %527 = dma.done.wait [#allocation3], 512  }
   0xe   :  { %528 = vsyncadd [#allocation3], 4294966784  ;;  %vm40_vm0 = vcmask 130048   ;;  %v38_v0 = vld [vmem:[%s600_s1 + $0x8] sm:$0xff]  ;;  %v37_v1 = vld [vmem:[%s600_s1] sm:$0xff]  ;;  %vm127_vm1 = vcmask 64512   ;;  %v123_v11 = vlaneseq }
   0xf   :  { %v35_v2 = vld [vmem:[%s599_s0] sm:$0xff]  ;;  %445 = vmatprep.subr.mxu0 %v38_v0  ;;  %v36_v3 = vld [vmem:[%s599_s0 + $0x8] sm:$0xff]  ;;  %v214_v7 = vld [vmem:[#allocation2 + $0x18] sm:$0xff]  ;;  %vm215_vm2 = vcmask 261120  }
  0x10   :  { %449 = vmatprep.mubr.msk.f32.mxu0 %vm40_vm0, %v35_v2  ;;  %446 = vmatpush3.msra.mxu0 %v38_v0  ;;  %v122_v4 = vld [vmem:[%s601_s2] sm:$0xff]  ;;  %v213_v8 = vld [vmem:[#allocation2 + $0x10] sm:$0xff]  ;;  %v212_v9 = vld [vmem:[#allocation2 + $0x8] sm:$0xff]  ;;  %v124_v12 = vshrl.u32 %v123_v11, 7  ;;  %v377_v26 = vand.u32 127, %v123_v11 }
  0x11   :  { %447 = vmatprep.subr.mxu0 %v37_v1  ;;  %452 = vmatprep.subr.mxu1 %v122_v4  ;;  %v211_v10 = vld [vmem:[#allocation2] sm:$0xff] }
  0x12   :  { %448 = vmatpush3.msra.mxu0 %v37_v1  ;;  %453 = vmatpush3.msra.mxu1 %v122_v4  ;;  %v125_v13 = vsub.s32 0, %v124_v12  ;;  %v39_v14 = vld [vmem:[%s603_s4] sm:$0x3]  ;;  %v299_v24 = vsub.s32 1, %v124_v12  ;;  %vm378_vm3 = vcmp.lt.s32.totalorder %v377_v26, 4  ;;  %s534_s4 = smov [#allocation5]  }
  0x13   :  { %450 = vmatmul.mubr.msk.f32.vlgmr.msra.gmra.mxu0 %vm40_vm0, %v36_v3  ;;  %457 = vmatprep.subr.mxu1 %v214_v7  ;;  %s408_s8 = sshll.u32 %s534_s4, 4  ;;  %s409_s8 = int_to_ptr.vmem [resolvable:$true] %s408_s8 }
  0x14   :  { %472 = vmatprep.mubr.msk.f32.mxu0 %vm40_vm0, %v35_v2  ;;  %v126_v15 = vrot.slane %v39_v14, %v125_v13  ;;  %v300_v27 = vrot.slane %v39_v14, %v299_v24  ;;  %s507_s9 = scalar_lea.vmem %s409_s8, 256  ;;  %p512_p6 = scmp.lt.s32.totalorder %s409_s8, %s409_s8 }
  0x15   :  { %p508_p5 = scmp.ne.s32.totalorder %s409_s8, %s507_s9  ;;  %p513_p7 = scmp.lt.s32.totalorder %s507_s9, %s507_s9 }
  0x17   :  { %p514_p8 = por %p513_p7, %p512_p6 }
  0x19   :  { %p515_p9 = pnand %p514_p8, %p508_p5 }
  0xd3   :  { %v451_v5 = vpop.f32.mrf.mxu0 }
  0xd5   :  { %v113_v6 = vpop.f32.mrf.mxu0 }
  0xd6   :  { %454 = vmatprep.mubr.msk.f32.mxu1 %vm127_vm1, %v113_v6 }
  0xd7   :  { %455 = vmatmul.mubr.msk.f32.vlgmr.msra.gmra.mxu1 %vm127_vm1, %v451_v5 }
  0xd8   :  { %458 = vmatpush3.msra.mxu1 %v214_v7 }
  0xd9   :  { %459 = vmatprep.subr.mxu1 %v213_v8 }
  0xda   :  { %460 = vmatpush3.msra.mxu1 %v213_v8 }
  0xdb   :  { %461 = vmatprep.subr.mxu1 %v212_v9 }
  0xdc   :  { %462 = vmatpush3.msra.mxu1 %v212_v9 }
  0xdd   :  { %463 = vmatprep.subr.mxu1 %v211_v10 }
  0xde   :  { %464 = vmatpush3.msra.mxu1 %v211_v10 }
 0x197   :  { %v456_v16 = vpop.f32.mrf.mxu1 }
 0x198   :  { %v206_v17 = vadd.f32 %v456_v16, %v126_v15 }
 0x199   :  { %v200_v18 = vpop.f32.mrf.mxu1 }
 0x19a   :  { %v201_v19 = vadd.f32 %v200_v18, %v126_v15  ;;  %v210_v21 = vmax.f32 %v206_v17, 0.0 }
 0x19c   :  { %v209_v20 = vmax.f32 %v201_v19, 0.0 }
 0x19e   :  { %465 = vmatprep.mubr.msk.f32.mxu1 %vm215_vm2, %v209_v20 }
 0x19f   :  { %466 = vmatmul.mubr.msk.f32.vlgmr.msra.gmra.mxu1 %vm215_vm2, %v210_v21 }
 0x25f   :  { %v467_v22 = vpop.f32.mrf.mxu1 }
 0x260   :  { %468 = vmatprep.subr.mxu0 %v467_v22 }
 0x261   :  { %v288_v23 = vpop.f32.mrf.mxu1  ;;  %469 = vmatpush3.msra.mxu0 %v467_v22 }
 0x262   :  { %470 = vmatprep.subr.mxu0 %v288_v23 }
 0x263   :  { %471 = vmatpush3.msra.mxu0 %v288_v23 }
 0x264   :  { %473 = vmatmul.mubr.msk.f32.vlgmr.msra.gmra.mxu0 %vm40_vm0, %v36_v3 }
 0x324   :  { %v474_v25 = vpop.f32.mrf.mxu0 }
 0x325   :  { %v373_v30 = vadd.f32 %v474_v25, %v300_v27 }
 0x326   :  { %v367_v28 = vpop.f32.mrf.mxu0 }
 0x327   :  { %v368_v29 = vadd.f32 %v367_v28, %v300_v27  ;;  %v380_v32 = vsel %vm378_vm3, %v373_v30, -1e+30 }
 0x329   :  { %v379_v31 = vsel %vm378_vm3, %v368_v29, -1e+30 }
 0x32a   :  { %381 = vmax.xlane.f32.xlu0 %v379_v31 }
 0x32e   :  { %383 = vmax.xlane.f32.xlu0 %v380_v32 }
 0x3b3   :  { %v382_v33 = vpop.xlane.xlu0 %381 }
 0x3b4   :  { %v385_v34 = vsub.f32 %v379_v31, %v382_v33 }
 0x3b6   :  { %v387_v35 = vmul.f32 1.442695, %v385_v34 }
 0x3b7   :  { %v384_v36 = vpop.xlane.xlu0 %383 }
 0x3b8   :  { %v386_v37 = vsub.f32 %v380_v32, %v384_v36  ;;  %479 = vpow2.f32 %v387_v35 }
 0x3ba   :  { %v389_v38 = vmul.f32 1.442695, %v386_v37 }
 0x3bc   :  { %481 = vpow2.f32 %v389_v38 }
 0x3c5   :  { %v480_v39 = vpop.eup %479 }
 0x3c6   :  { %391 = vadd.xlane.f32.xlu1 %v480_v39 }
 0x3c9   :  { %v482_v40 = vpop.eup %481 }
 0x3ca   :  { %393 = vadd.xlane.f32.xlu1 %v482_v40 }
 0x44f   :  { %v392_v41 = vpop.xlane.xlu1 %391 }
 0x450   :  { %483 = vlog2.f32 %v392_v41 }
 0x453   :  { %v394_v42 = vpop.xlane.xlu1 %393 }
 0x454   :  { %485 = vlog2.f32 %v394_v42 }
 0x45d   :  { %v484_v43 = vpop.eup %483 }
 0x45e   :  { %v396_v44 = vmul.f32 0.6931472, %v484_v43 }
 0x460   :  { %v399_v45 = vsub.f32 %v385_v34, %v396_v44 }
 0x461   :  { %v486_v46 = vpop.eup %485 }
 0x462   :  { %v398_v47 = vmul.f32 0.6931472, %v486_v46  ;;  %401 = vst [vmem:[#allocation5] sm:$0xff] %v399_v45 }
 0x464   :  { %v400_v48 = vsub.f32 %v386_v37, %v398_v47 }
 0x466   :  { %402 = vst [vmem:[#allocation5 + $0x8] sm:$0xff] %v400_v48 }
 0x467   :  { %518 = shalt.err (!%p515_p9)
}
 0x468   :  { %414 = dma.vmem_to_hbm [thread:$0]  %s409_s8, 256, %s604_s5, [#allocation4], %s532_s21, %s532_s21, %s533_s22  }
 0x469   :  { %529 = dma.done.wait [#allocation4], 256  }
 0x46a   :  { %530 = vsyncadd [#allocation4], 4294967040 }
 0x46b   :  { %418 = vsyncpa [#allocation3], 1 }
 0x46c   :  { %419 = vsyncpa [#allocation4], 1 }

</bundles_post_ra>
